<compile_context>
chip_gen: v5e
topology: v5e:2x2
jax: 0.10.0
libtpu: 0.0.40
codegen_flags: <defaults>
</compile_context>

<pallas_src>
import jax
import jax.numpy as jnp
from jax.experimental import pallas as pl
from jax.experimental.pallas import tpu as pltpu


# ---------------------------------------------------------------------------
# Pallas kernel: per-batch patch gather via a one-hot MXU matmul
# ---------------------------------------------------------------------------
def _patch_gather_kernel(idx_ref, x_ref, o_ref):
    # idx_ref: (B, K) int32 index table, resident in VMEM (constant index_map)
    # x_ref:   (N, D) activation block for batch element b (batch dim squeezed)
    # o_ref:   (K, D) output block for batch element b
    b = pl.program_id(0)
    N = x_ref.shape[0]
    K = o_ref.shape[0]

    # Row of kept-patch indices for this batch element: (1, K) int32.
    idx_row = idx_ref[pl.ds(b, 1), :]

    # One-hot selection matrix in the layout-friendly (N, K) orientation
    # (iota along sublanes, indices broadcast along lanes): onehot[n, k] = (idx[k] == n).
    row_ids = jax.lax.broadcasted_iota(jnp.int32, (N, K), 0)
    onehot = (row_ids == idx_row).astype(x_ref.dtype)

    # out[k, d] = sum_n onehot[n, k] * x[n, d]  — single MXU matmul instead of
    # K serial (1, D) sublane copies.  Contract dim 0 of both operands.
    gathered = jax.lax.dot_general(
        onehot,
        x_ref[...],
        dimension_numbers=(((0,), (0,)), ((), ())),
        preferred_element_type=jnp.float32,
    )
    o_ref[...] = gathered.astype(o_ref.dtype)


def patch_gather(x, indices):
    """out[b, k, :] = x[b, indices[b, k], :] — one grid step per batch element."""
    B, N, D = x.shape
    K = indices.shape[1]
    return pl.pallas_call(
        _patch_gather_kernel,
        out_shape=jax.ShapeDtypeStruct((B, K, D), x.dtype),
        grid_spec=pltpu.PrefetchScalarGridSpec(
            num_scalar_prefetch=0,
            grid=(B,),
            in_specs=[
                # Small index table: full-array block, constant index_map → fetched once.
                pl.BlockSpec((B, K), lambda b: (0, 0)),
                # Activations for batch element b.
                pl.BlockSpec((None, N, D), lambda b: (b, 0, 0)),
            ],
            out_specs=pl.BlockSpec((None, K, D), lambda b: (b, 0, 0)),
        ),
        compiler_params=pltpu.CompilerParams(
            dimension_semantics=("parallel",)),
    )(indices, x)


# ---------------------------------------------------------------------------
# Module-level forward (matches PatchDropout.forward semantics)
# ---------------------------------------------------------------------------
def patch_dropout_forward(x, key, *, prob, training=True):
    assert 0 <= prob < 1.0
    if not training or prob == 0.0:
        return x
    B, N, _ = x.shape
    num_keep = max(1, int(N * (1 - prob)))
    # torch.randn(b, n).topk(num_keep, dim=-1).indices  →  random top-k patch indices.
    # TODO(synk): random-score top-k index selection stays in XLA (jax.lax.top_k);
    # it is tiny scalar work with no clean/profitable Pallas equivalent.
    scores = jax.random.normal(key, (B, N), jnp.float32)
    _, keep_idx = jax.lax.top_k(scores, num_keep)
    return patch_gather(x, keep_idx.astype(jnp.int32))


# ---------------------------------------------------------------------------
# Pure-JAX reference gather for validation
# ---------------------------------------------------------------------------
def patch_dropout_reference(x, keep_idx):
    B = x.shape[0]
    return x[jnp.arange(B)[:, None], keep_idx]


# ---------------------------------------------------------------------------
# Main
# ---------------------------------------------------------------------------
if __name__ == "__main__":
    B, N, D = 2, 16, 128        # (batch, num_patches, dim); D is lane-dense (multiple of 128)
    prob = 0.5                  # keeps max(1, int(16 * 0.5)) = 8 patches per batch row

    key = jax.random.PRNGKey(0)
    xk, sk = jax.random.split(key)
    x = jax.random.normal(xk, (B, N, D), jnp.float32)

    out = patch_dropout_forward(x, sk, prob=prob, training=True)
    out = jax.block_until_ready(out)

    # Rebuild the same indices (same key) and validate the gather.
    num_keep = max(1, int(N * (1 - prob)))
    scores = jax.random.normal(sk, (B, N), jnp.float32)
    _, keep_idx = jax.lax.top_k(scores, num_keep)
    ref = patch_dropout_reference(x, keep_idx)

    assert out.shape == (B, num_keep, D)
    assert bool(jnp.all(jnp.isfinite(out)))
    assert bool(jnp.allclose(out, ref, rtol=1e-5, atol=1e-5)), "mismatch vs reference gather"

    # Eval mode / prob == 0.0 returns the input unchanged (module's early-return path).
    out_eval = patch_dropout_forward(x, sk, prob=prob, training=False)
    assert bool(jnp.array_equal(out_eval, x))

    print("KERNEL_OK")
</pallas_src>

<mosaic_0001>
module attributes {stable_mosaic.version = 11 : i64} {
  func.func @_patch_gather_kernel(%arg0: i32, %arg1: memref<2x8xi32, #tpu.memory_space<vmem>>, %arg2: memref<1x16x128xf32, #tpu.memory_space<vmem>>, %arg3: memref<1x8x128xf32, #tpu.memory_space<vmem>>) attributes {dimension_semantics = [#tpu.dimension_semantics<parallel>], iteration_bounds = array<i64: 2>, scalar_prefetch = 0 : i64, scratch_operands = 0 : i64, tpu.core_type = #tpu.core_type<tc>, window_params = [{pipeline_mode = #tpu.pipeline_mode<synchronous>, transform_indices = @transform_0, window_bounds = array<i64: 2, 8>}, {transform_indices = @transform_1, window_bounds = array<i64: 1, 16, 128>}, {transform_indices = @transform_2, window_bounds = array<i64: 1, 8, 128>}]} {
    %0 = arith.index_cast %arg0 : i32 to index
    %c0 = arith.constant 0 : index
    %1 = vector.load %arg1[%0, %c0] : memref<2x8xi32, #tpu.memory_space<vmem>>, vector<1x8xi32>
    %2 = tpu.iota {dimensions = array<i32: 0>} : vector<16x8xi32>
    %3 = vector.broadcast %1 : vector<1x8xi32> to vector<16x8xi32>
    %4 = arith.cmpi eq, %2, %3 : vector<16x8xi32>
    %5 = arith.extui %4 : vector<16x8xi1> to vector<16x8xi32>
    %6 = arith.sitofp %5 : vector<16x8xi32> to vector<16x8xf32>
    %c0_0 = arith.constant 0 : index
    %c0_1 = arith.constant 0 : index
    %c0_2 = arith.constant 0 : index
    %7 = vector.load %arg2[%c0_0, %c0_1, %c0_2] : memref<1x16x128xf32, #tpu.memory_space<vmem>>, vector<1x16x128xf32>
    %8 = vector.shape_cast %7 : vector<1x16x128xf32> to vector<16x128xf32>
    %cst = arith.constant dense<0.000000e+00> : vector<8x128xf32>
    %9 = tpu.matmul %6, %8, %cst {dimension_numbers = #tpu.dot_dimension_numbers<[0], [0], [1], [1], [0, 1, 1, 1], [], []>} : vector<16x8xf32>, vector<16x128xf32>, vector<8x128xf32> -> vector<8x128xf32>
    %c0_3 = arith.constant 0 : index
    %c0_4 = arith.constant 0 : index
    %c0_5 = arith.constant 0 : index
    %10 = vector.load %arg3[%c0_3, %c0_4, %c0_5] : memref<1x8x128xf32, #tpu.memory_space<vmem>>, vector<1x8x128xf32>
    %11 = vector.shape_cast %10 : vector<1x8x128xf32> to vector<8x128xf32>
    %12 = vector.shape_cast %9 : vector<8x128xf32> to vector<1x8x128xf32>
    tpu.vector_store %arg3[%c0_3, %c0_4, %c0_5], %12 {strides = array<i32>} : memref<1x8x128xf32, #tpu.memory_space<vmem>>, vector<1x8x128xf32>,
    return
  }
  func.func @transform_0(%arg0: i32) -> (i32, i32) {
    %c0_i32 = arith.constant 0 : i32
    %c0_i32_0 = arith.constant 0 : i32
    %c0_i32_1 = arith.constant 0 : i32
    return %c0_i32, %c0_i32_0 : i32, i32
  }
  func.func @transform_1(%arg0: i32) -> (i32, i32, i32) {
    %c0_i32 = arith.constant 0 : i32
    %c0_i32_0 = arith.constant 0 : i32
    %c0_i32_1 = arith.constant 0 : i32
    return %arg0, %c0_i32, %c0_i32_0 : i32, i32, i32
  }
  func.func @transform_2(%arg0: i32) -> (i32, i32, i32) {
    %c0_i32 = arith.constant 0 : i32
    %c0_i32_0 = arith.constant 0 : i32
    %c0_i32_1 = arith.constant 0 : i32
    return %arg0, %c0_i32, %c0_i32_0 : i32, i32, i32
  }
}

</mosaic_0001>

<bundles_post_ra>
// kernel: tpu_custom_call.1
= control target key start
LH: loop header
LB: loop body
LE: loop exit
PB: predicated region body
PF: predicated region fallthrough
CT: control target
= control target key end

     0   :  { %7 = vsyncpa [#allocation3], 0  ;;  %s728_s0 = inlined_call_operand.hbm [shape: s32[2,8], index: 0, kind: input, shape index: {}]   ;;  %s729_s1 = inlined_call_operand.hbm [shape: f32[2,16,128], index: 1, kind: input, shape index: {}]   ;;  %s730_s2 = inlined_call_operand.hbm [shape: f32[2,8,128], index: 2, kind: output, shape index: {}]  }
   0x1   :  { %8 = vsyncpa [#allocation6], 0 }
   0x2   :  { %10 = vsyncpa [#allocation6 + $0x1], 0 }
   0x3   :  { %11 = vsyncpa [#allocation4], 0 }
   0x4   :  { %13 = vsyncpa [#allocation4 + $0x1], 0  ;;  %s584_s9 = smov 0   ;;  %s586_s10 = smov 0  }
   0x5   :  { %s588_s11 = smov 0   ;;  %s590_s12 = smov 0  }
   0x6 LB: > { %s605_s13 = sadd.s32 4294967295, %s563_s12   ;;  %s349_s14 = sadd.s32 4294967294, %s563_s12   ;;  %s563_s12 = sphi %s590_s12, %s741_s12   ;;  %s559_s11 = sphi %s588_s11, %s740_s11   ;;  %s555_s10 = sphi %s586_s10, %s739_s10   ;;  %s551_s9 = sphi %s584_s9, %s738_s9  }
   0x7   : > { %s609_s15 = sadd.s32 1, %s563_s12   ;;  %s47_s16 = sadd.s32 1, %s559_s11 }
   0x8   : > { %s44_s17 = ssub.s32 %s563_s12, %s609_s15  ;;  %p54_p0 = scmp.ne.s32.totalorder %s559_s11, %s555_s10 }
   0x9   : > { %p45_p1 = scmp.eq.s32.totalorder %s44_s17, 0  ;;  %p55_p2 = scmp.eq.s32.totalorder %s563_s12, 0 }
   0xa   : > { %p60_p3 = scmp.ne.s32.totalorder %s555_s10, %s551_s9  ;;  %p61_p4 = scmp.eq.s32.totalorder %s605_s13, 0 }
   0xb   : > { %s621_s18 = scalar_select %p45_p1, %s559_s11, %s47_s16  }
   0xc   : > { %p623_p5 = por %p55_p2, %p54_p0  ;;  %p629_p6 = por %p61_p4, %p60_p3 }
   0xd   : > { %p84_p7 = scmp.eq.s32.totalorder %s605_s13, 1  ;;  %p90_p8 = scmp.eq.s32.totalorder %s349_s14, 1 }
   0xe   : > { %p350_p9 = scmp.ge.s32.totalorder %s563_s12, 1  ;;  %p97_p10 = scmp.lt.s32.totalorder %s563_s12, 3 }
   0xf   : > { %p636_p11 = por %p84_p7, %p54_p0  ;;  %p640_p12 = por %p90_p8, %p60_p3 }
  0x10   : > { %p644_p13 = pnand %p350_p9, %p97_p10  ;;  %s109_s26 = sshll.u32 %s728_s0, 4  ;;  %s110_s26 = int_to_ptr.hbm [resolvable:$true] %s109_s26 }
  0x11   : > { %s565_s27 = smov [#allocation2]   ;;  %p393_p3 = scmp.lt.s32.totalorder %s563_s12, 2 }
  0x12   : > { %p380_p1 = pneg %p644_p13  ;;  %s111_s28 = sshll.u32 %s565_s27, 4  ;;  %s112_s28 = int_to_ptr.vmem [resolvable:$true] %s111_s28 }
  0x13   : > { %s122_s29 = sand.u32 1, %s559_s11   ;;  %p660_p7 = pnand %p393_p3, %p623_p5 }
  0x14   : > { %p381_p2 = pnand %p380_p1, %p61_p4  ;;  %s353_s3 = sshll.u32 %s122_s29, 4 }
  0x15   : > { %s368_s4 = sshll.u32 %s563_s12, 4  ;;  %s126_s14 = scalar_lea.vmem [#allocation5], %s353_s3 }
  0x16   : > { %383 = dma.hbm_to_vmem [thread:$0]  (!%p381_p2), %s110_s26, 32, %s112_s28, [#allocation3]  }
  0x17   : > { %s131_s7 = scalar_lea.hbm %s729_s1, %s368_s4  ;;  %s134_s16 = sshll.u32 %s126_s14, 4  ;;  %s135_s16 = int_to_ptr.vmem [resolvable:$true] %s134_s16 }
  0x18   : > { %s132_s8 = sshll.u32 %s131_s7, 4  ;;  %s123_s17 = scalar_lea.sflag [#allocation6], %s122_s29  ;;  %s133_s8 = int_to_ptr.hbm [resolvable:$true] %s132_s8 }
  0x19   : > { %s463_s24 = sshra.s32 %s133_s8, 4  ;;  %p467_p8 = pneg %p660_p7  ;;  %s464_s24 = int_to_ptr.hbm [resolvable:$true] %s463_s24 }
  0x1a   : > { %s465_s19 = scalar_lea.hbm %s464_s24, 16  ;;  %s470_s27 = scalar_lea.hbm %s729_s1, 32 }
  0x1b   : > { %p466_p5 = scmp.ne.s32.totalorder %s464_s24, %s465_s19  ;;  %p471_p1 = scmp.lt.s32.totalorder %s464_s24, %s729_s1 }
  0x1c   : > { %p472_p2 = scmp.lt.s32.totalorder %s470_s27, %s465_s19 }
  0x1d   : > { %p468_p9 = pnand %p467_p8, %p466_p5 }
  0x1e   : > { %p473_p3 = por %p472_p2, %p471_p1 }
  0x1f   : > { %p469_p10 = pneg %p468_p9 }
  0x21   : > { %p474_p0 = pnand %p473_p3, %p469_p10 }
  0x23   : > { %477 = shalt.err (!%p474_p0)
}
  0x24   : > { %s566_s29 = smov 128   ;;  %s567_s3 = smov 8  }
  0x25   : > { %387 = dma.hbm_to_vmem [thread:$0]  (!%p660_p7), %s133_s8, 256, %s135_s16, %s123_s17, %s566_s29, %s566_s29, %s567_s3  }
  0x26   : > { %146 = sbr.rel (%p644_p13) target bundleno = 348 (0x15c), region = 28 }
  0x2b   : > { %538 = dma.done.wait (%p61_p4), [#allocation3], 32  }
  0x2c   : > { %540 = vsyncadd (%p61_p4), [#allocation3], 4294967264  ;;  %s685_s5 = sand.u32 1, %s555_s10  }
  0x2d   : > { %s358_s6 = sshll.u32 %s685_s5, 4  ;;  %s154_s7 = scalar_lea.sflag [#allocation6], %s685_s5 }
  0x2e   : > { %s157_s14 = scalar_lea.vmem [#allocation5], %s358_s6 }
  0x2f   : > { %542 = dma.done.wait (%p629_p6), %s154_s7, 256  }
  0x30   : > { %544 = vsyncadd (%p629_p6), %s154_s7, 4294967040  ;;  %v181_v0 = vlaneseq  ;;  %s369_s23 = scalar_lea.vmem [#allocation2], %s563_s12  ;;  %v192_v3 = vld [vmem:[%s157_s14 + $0x8] sm:$0xff]  ;;  %v191_v4 = vld [vmem:[%s157_s14] sm:$0xff]  ;;  %v568_v6 = vmov 0.0   ;;  %vm225_vm2 = vcmask 130048  }
  0x31   : > { %v432_v2 = vld [vmem:[%s369_s23 - $0x1] ss:$0 sm:$0xff]  ;;  %243 = vmatpush.msra.mxu0 %v192_v3  ;;  %s359_s20 = sshll.u32 %s685_s5, 3  ;;  %s365_s30 = sshll.u32 %s605_s13, 3 }
  0x32   : > { %v182_v1 = vshrl.u32 %v181_v0, 7  ;;  %s261_s17 = scalar_lea.hbm %s730_s2, %s365_s30  ;;  %s178_s24 = scalar_lea.vmem [#allocation7], %s359_s20 }
  0x33   : > { %244 = vmatpush.msra.mxu0 %v191_v4  ;;  %s263_s19 = sshll.u32 %s178_s24, 4  ;;  %s265_s25 = sshll.u32 %s261_s17, 4  ;;  %s264_s19 = int_to_ptr.vmem [resolvable:$true] %s263_s19  ;;  %s266_s25 = int_to_ptr.hbm [resolvable:$true] %s265_s25 }
  0x34   : > { %vm185_vm0 = vcmp.eq.s32.totalorder %v182_v1, %v432_v2  ;;  %v183_v5 = vadd.s32 8, %v182_v1  ;;  %s251_s26 = scalar_lea.sflag [#allocation4], %s685_s5  ;;  %s507_s27 = sshra.s32 %s266_s25, 4  ;;  %s508_s27 = int_to_ptr.hbm [resolvable:$true] %s507_s27 }
  0x35   : > { %v361_v7 = vsel %vm185_vm0, 1.0, %v568_v6  ;;  %s509_s28 = scalar_lea.hbm %s508_s27, 8  ;;  %s513_s29 = scalar_lea.hbm %s730_s2, 16 }
  0x36   : > { %193 = vxpose.xlu0.b32.start [1/2] (short) (narrow) %v361_v7, 8  ;;  %vm186_vm1 = vcmp.eq.s32.totalorder %v183_v5, %v432_v2  ;;  %p510_p4 = scmp.ne.s32.totalorder %s508_s27, %s509_s28  ;;  %p514_p0 = scmp.lt.s32.totalorder %s508_s27, %s730_s2 }
  0x37   : > { %v362_v8 = vsel %vm186_vm1, 1.0, %v568_v6  ;;  %p515_p7 = scmp.lt.s32.totalorder %s513_s29, %s509_s28 }
  0x38   : > { %p511_p6 = pnand %p510_p4, %p636_p11 }
  0x39   : > { %p516_p5 = por %p515_p7, %p514_p0 }
  0x3a   : > { %p512_p13 = pneg %p511_p6 }
  0x3c   : > { %p517_p8 = pnand %p516_p5, %p512_p13 }
  0x3e   : > { %194 = vxpose.xlu0.b32.end [2/2] (short) (narrow) %v362_v8, 8 }
  0xda   : > { %v209_v9 = vpop.trf.xlu0 }
  0xdb   : > { %363 = vmatmul.msk.f32.vlgmr.msra.gmra.mxu0 %vm225_vm2, %v209_v9 }
 0x158   : > { %v246_v10 = vpop.f32.mrf.mxu0 }
 0x159   : > { %249 = vst [vmem:[%s178_s24] sm:$0xff] %v246_v10 }
 0x15a   : > { %520 = shalt.err (!%p517_p8)
}
 0x15b   : > { %378 = dma.vmem_to_hbm [thread:$0]  (%p636_p11), %s264_s19, 128, %s266_s25, %s251_s26  }
 0x15c PF: > { %s277_s5 = sand.u32 1, %s551_s9   ;;  %p737_p9 = scmp.ge.s32.totalorder %s563_s12, 2 }
 0x15d   : > { %s278_s7 = scalar_lea.sflag [#allocation4], %s277_s5 }
 0x15e   : > { %p389_p10 = pnand %p737_p9, %p640_p12 }
 0x160   : > { %p390_p1 = pneg %p389_p10 }
 0x162   : > { %546 = dma.done.wait (%p390_p1), %s278_s7, 128  }
 0x163   : > { %548 = vsyncadd (%p390_p1), %s278_s7, 4294967168  ;;  %p16_p2 = scmp.ge.s32.totalorder %s609_s15, 4   ;;  %s738_s9 = smov %s555_s10 }
 0x164   : > { %s739_s10 = smov %s559_s11  ;;  %s740_s11 = smov %s621_s18 }
 0x165   : > { %s741_s12 = smov %s609_s15  ;;  %18 = sbr.rel (!%p16_p2) target bundleno = 6 (0x6), region = 79 }
 0x16a   :  { %284 = vsyncpa [#allocation3], 1 }
 0x16b   :  { %286 = vsyncpa [#allocation3 + $0x1], 1 }
 0x16c   :  { %287 = vsyncpa [#allocation6], 1 }
 0x16d   :  { %289 = vsyncpa [#allocation6 + $0x1], 1 }
 0x16e   :  { %290 = vsyncpa [#allocation4], 1 }
 0x16f   :  { %292 = vsyncpa [#allocation4 + $0x1], 1 }

</bundles_post_ra>
